<compile_context>
chip_gen: v7x
topology: tpu7x:2x2x1
jax: 0.10.0
libtpu: 0.0.40
codegen_flags: <defaults>
</compile_context>

<pallas_src>
import jax
import jax.numpy as jnp
from jax.experimental import pallas as pl
from jax.experimental.pallas import tpu as pltpu


# ------------------------------------------------------------------
# Fused kernel factory (static T / B / num_layers baked in via closure).
# ------------------------------------------------------------------
def _make_fused_kernel(text_size, batch_size, num_layers):
    T, B = text_size, batch_size
    TB = T * B

    def kernel(*refs):
        ctx_ref, emb_ref = refs[0], refs[1]
        rnn_refs = refs[2:2 + 3 * num_layers]
        (w1T_ref, b1_ref, w3T_ref, b3_ref,
         w2a_ref, w2b_ref, b2_ref) = refs[2 + 3 * num_layers:9 + 3 * num_layers]
        out_ref = refs[9 + 3 * num_layers]

        V = emb_ref.shape[0]

        # ---- Embedding gather as a one-hot matmul (MXU-friendly; valid for toy V). ----
        ids = ctx_ref[...]                                        # (TB, 1) int32, (t,b)-major
        iota_v = jax.lax.broadcasted_iota(jnp.int32, (TB, V), 1)
        onehot = (iota_v == ids).astype(jnp.float32)              # (TB, V)
        x = jnp.dot(onehot, emb_ref[...],
                    preferred_element_type=jnp.float32)           # (TB, I)

        # ---- RNN layers: hoisted input projection + fully unrolled recurrence.
        #      Per-step hidden states stay in vregs; no scratch stores. ----
        for layer in range(num_layers):
            wihT = rnn_refs[3 * layer][...]                       # (in_dim, H)
            whhT = rnn_refs[3 * layer + 1][...]                   # (H, H)
            bsum = rnn_refs[3 * layer + 2][...]                   # (1, H) = b_ih + b_hh
            H = whhT.shape[0]
            pre = jnp.dot(x, wihT,
                          preferred_element_type=jnp.float32) + bsum   # (TB, H)

            h = jnp.zeros((B, H), jnp.float32)
            hs = []
            for t in range(T):                                    # fully unrolled
                h = jnp.tanh(pre[t * B:(t + 1) * B, :]
                             + jnp.dot(h, whhT,
                                       preferred_element_type=jnp.float32))
                hs.append(h)
            x = jnp.concatenate(hs, axis=0)                       # (TB, H), stays in vregs

        # ---- Linear1 -> Linear3 (300 zero-padded to 384 lanes at prepare time). ----
        y1 = jnp.dot(x, w1T_ref[...],
                     preferred_element_type=jnp.float32) + b1_ref[...]   # (TB, 384)
        y3 = jnp.dot(y1, w3T_ref[...],
                     preferred_element_type=jnp.float32) + b3_ref[...]   # (TB, 2)

        # ---- Linear2 over torch's .view([batch, text*2]) layout, reshape-free.
        #      z[r, o] = y3[r,0]*w2[o, 2*(r%T)] + y3[r,1]*w2[o, 2*(r%T)+1]
        #      logits[k, o] = sum over rows r in [k*T, (k+1)*T) of z[r, o] + b2[o]
        #      The group-sum selector is built in-register (no HBM seg input). ----
        z = y3[:, 0:1] * w2a_ref[...] + y3[:, 1:2] * w2b_ref[...]        # (TB, 2)
        kidx = jax.lax.broadcasted_iota(jnp.int32, (B, TB), 0)
        ridx = jax.lax.broadcasted_iota(jnp.int32, (B, TB), 1)
        seg = ((ridx >= kidx * T) & (ridx < kidx * T + T)).astype(jnp.float32)
        logits = jnp.dot(seg, z,
                         preferred_element_type=jnp.float32) + b2_ref[...]   # (batch, 2)

        # ---- softmax (exact reciprocal to stay within 1e-4 of the reference) ----
        m = jnp.max(logits, axis=1, keepdims=True)
        e = jnp.exp(logits - m)
        denom = jnp.sum(e, axis=1, keepdims=True)
        out_ref[...] = e * pl.reciprocal(denom, approx=False)

    return kernel


# ------------------------------------------------------------------
# One-time weight preparation (hoisted out of the per-call path).
# ------------------------------------------------------------------
def prepare_params(params, batch_size):
    H = params["rnn"][0]["w_hh"].shape[0]
    D1 = params["w1"].shape[0]                      # 300
    D1p = ((D1 + 127) // 128) * 128                 # 384 (lane-dense)
    T = params["w2"].shape[1] // 2                  # text_size
    TB = T * batch_size

    # RNN weights: transposed, biases pre-summed (b_ih + b_hh).
    rnn = []
    for layer in params["rnn"]:
        rnn.append((jnp.asarray(layer["w_ih"].T, jnp.float32),
                    jnp.asarray(layer["w_hh"].T, jnp.float32),
                    (layer["b_ih"] + layer["b_hh"]).reshape(1, H).astype(jnp.float32)))

    # MLP weights, zero-padded on the 300-wide dim (result is unchanged).
    w1T = jnp.zeros((H, D1p), jnp.float32).at[:, :D1].set(params["w1"].T)
    b1 = jnp.zeros((1, D1p), jnp.float32).at[:, :D1].set(params["b1"])
    w3T = jnp.zeros((D1p, 2), jnp.float32).at[:D1, :].set(params["w3"].T)
    b3 = params["b3"].reshape(1, 2)

    # Head: per-row w2 columns reproducing .view([batch, text*2]) @ w2.T
    # (row r of the (TB, 2) Linear3 output maps to view column 2*(r % T) + c).
    r = jnp.arange(TB)
    m_idx = r % T
    w2 = params["w2"]                               # (2, T*2)
    w2a = w2[:, 2 * m_idx + 0].T                    # (TB, 2)
    w2b = w2[:, 2 * m_idx + 1].T                    # (TB, 2)
    b2 = params["b2"].reshape(1, 2)

    return dict(emb=jnp.asarray(params["emb"], jnp.float32), rnn=tuple(rnn),
                w1T=w1T, b1=b1, w3T=w3T, b3=b3, w2a=w2a, w2b=w2b, b2=b2)


# ------------------------------------------------------------------
# Per-call wrapper: token reshape + a single grid-less pallas_call.
# ------------------------------------------------------------------
def rnn_imdb_forward(prepared, context):
    T, B = context.shape
    TB = T * B
    num_layers = len(prepared["rnn"])
    assert prepared["w2a"].shape[0] == TB

    # Token ids flattened in (t, b) order, matching the torch (T, B, ...) layout.
    # TODO(synk): for the realistic-vocab DMA-gather variant these should go through
    #             scalar prefetch into SMEM instead of a narrow VMEM column block.
    ctx2d = context.reshape(TB, 1).astype(jnp.int32)

    flat_in = [ctx2d, prepared["emb"]]
    for wihT, whhT, bsum in prepared["rnn"]:
        flat_in += [wihT, whhT, bsum]
    flat_in += [prepared["w1T"], prepared["b1"], prepared["w3T"], prepared["b3"],
                prepared["w2a"], prepared["w2b"], prepared["b2"]]

    kernel = _make_fused_kernel(T, B, num_layers)

    # Grid-less call: every input is a single whole-array VMEM buffer (no
    # double-buffering, no pipeline overhead); everything fits well under the
    # scoped VMEM default at these shapes.
    return pl.pallas_call(
        kernel,
        out_shape=jax.ShapeDtypeStruct((B, 2), jnp.float32),
        in_specs=[pl.BlockSpec(memory_space=pltpu.MemorySpace.VMEM)] * len(flat_in),
        out_specs=pl.BlockSpec(memory_space=pltpu.MemorySpace.VMEM),
    )(*flat_in)


# ------------------------------------------------------------------
# Parameter construction (mirrors the PyTorch module's parameter shapes).
# ------------------------------------------------------------------
def init_params(key, vocabulary_len, text_size, input_size, hidden_size,
                num_layers):
    ks = iter(jax.random.split(key, 4 + 4 * num_layers + 6))
    u = lambda k, shape, bound: jax.random.uniform(
        k, shape, jnp.float32, -bound, bound)

    emb = jax.random.normal(next(ks), (vocabulary_len + 1, input_size),
                            jnp.float32)
    emb = emb.at[vocabulary_len].set(0.0)   # padding_idx row is zero

    rnn = []
    rb = 1.0 / jnp.sqrt(hidden_size)
    for layer in range(num_layers):
        in_dim = input_size if layer == 0 else hidden_size
        rnn.append(dict(
            w_ih=u(next(ks), (hidden_size, in_dim), rb),
            w_hh=u(next(ks), (hidden_size, hidden_size), rb),
            b_ih=u(next(ks), (hidden_size,), rb),
            b_hh=u(next(ks), (hidden_size,), rb),
        ))

    b1 = 1.0 / jnp.sqrt(hidden_size)
    w1 = u(next(ks), (300, hidden_size), b1)
    bias1 = u(next(ks), (300,), b1)
    b3 = 1.0 / jnp.sqrt(300.0)
    w3 = u(next(ks), (2, 300), b3)
    bias3 = u(next(ks), (2,), b3)
    b2 = 1.0 / jnp.sqrt(text_size * 2)
    w2 = u(next(ks), (2, text_size * 2), b2)
    bias2 = u(next(ks), (2,), b2)

    return dict(emb=emb, rnn=rnn, w1=w1, b1=bias1, w3=w3, b3=bias3,
                w2=w2, b2=bias2)


# ------------------------------------------------------------------
# Pure-JAX reference for correctness checking (reproduces the torch .view()
# interleaving quirk exactly — do NOT "fix" it into a transpose).
# ------------------------------------------------------------------
def rnn_imdb_reference(params, context, batch_size, text_size):
    emb = jnp.take(params["emb"], context, axis=0)
    h = emb
    for layer in params["rnn"]:
        _, B, _ = h.shape
        Hd = layer["w_hh"].shape[0]

        def step(h_prev, x_t, layer=layer):
            h_new = jnp.tanh(x_t @ layer["w_ih"].T + layer["b_ih"]
                             + h_prev @ layer["w_hh"].T + layer["b_hh"])
            return h_new, h_new

        _, h = jax.lax.scan(step, jnp.zeros((B, Hd), jnp.float32), h)
    y = h @ params["w1"].T + params["b1"]
    y = y @ params["w3"].T + params["b3"]
    y = y.reshape(batch_size, text_size * 2)
    logits = y @ params["w2"].T + params["b2"]
    return jax.nn.softmax(logits, axis=1)


if __name__ == "__main__":
    vocabulary_len = 50
    batch_size = 2
    text_size = 8
    input_size = 16
    hidden_size = 32
    num_layers = 1

    key = jax.random.PRNGKey(0)
    pkey, ckey = jax.random.split(key)
    params = init_params(pkey, vocabulary_len, text_size, input_size,
                         hidden_size, num_layers)
    # token ids in [0, vocabulary_len] (vocabulary_len == padding index)
    context = jax.random.randint(ckey, (text_size, batch_size), 0,
                                 vocabulary_len + 1, dtype=jnp.int32)

    # One-time weight preparation (hoisted out of the per-call path).
    prepared = prepare_params(params, batch_size)

    fwd = jax.jit(rnn_imdb_forward)
    out = jax.block_until_ready(fwd(prepared, context))

    ref = rnn_imdb_reference(params, context, batch_size, text_size)
    assert out.shape == (batch_size, 2)
    assert jnp.allclose(out, ref, atol=1e-4, rtol=1e-4), (out, ref)

    print("KERNEL_OK")
</pallas_src>

<mosaic_0001>
module attributes {stable_mosaic.version = 11 : i64} {
  func.func @kernel(%arg0: memref<16x1xi32, #tpu.memory_space<vmem>>, %arg1: memref<51x16xf32, #tpu.memory_space<vmem>>, %arg2: memref<16x32xf32, #tpu.memory_space<vmem>>, %arg3: memref<32x32xf32, #tpu.memory_space<vmem>>, %arg4: memref<1x32xf32, #tpu.memory_space<vmem>>, %arg5: memref<32x384xf32, #tpu.memory_space<vmem>>, %arg6: memref<1x384xf32, #tpu.memory_space<vmem>>, %arg7: memref<384x2xf32, #tpu.memory_space<vmem>>, %arg8: memref<1x2xf32, #tpu.memory_space<vmem>>, %arg9: memref<16x2xf32, #tpu.memory_space<vmem>>, %arg10: memref<16x2xf32, #tpu.memory_space<vmem>>, %arg11: memref<1x2xf32, #tpu.memory_space<vmem>>, %arg12: memref<2x2xf32, #tpu.memory_space<vmem>>) attributes {dimension_semantics = [], scalar_prefetch = 0 : i64, scratch_operands = 0 : i64, tpu.core_type = #tpu.core_type<tc>} {
    %c0 = arith.constant 0 : index
    %c0_0 = arith.constant 0 : index
    %0 = vector.load %arg0[%c0, %c0_0] : memref<16x1xi32, #tpu.memory_space<vmem>>, vector<16x1xi32>
    %1 = tpu.iota {dimensions = array<i32: 1>} : vector<16x51xi32>
    %2 = vector.broadcast %0 : vector<16x1xi32> to vector<16x51xi32>
    %3 = arith.cmpi eq, %1, %2 : vector<16x51xi32>
    %4 = arith.extui %3 : vector<16x51xi1> to vector<16x51xi32>
    %5 = arith.sitofp %4 : vector<16x51xi32> to vector<16x51xf32>
    %c0_1 = arith.constant 0 : index
    %c0_2 = arith.constant 0 : index
    %6 = vector.load %arg1[%c0_1, %c0_2] : memref<51x16xf32, #tpu.memory_space<vmem>>, vector<51x16xf32>
    %cst = arith.constant dense<0.000000e+00> : vector<16x16xf32>
    %7 = tpu.matmul %5, %6, %cst {dimension_numbers = #tpu.dot_dimension_numbers<[1], [0], [0], [1], [0, 0, 1, 1], [], []>} : vector<16x51xf32>, vector<51x16xf32>, vector<16x16xf32> -> vector<16x16xf32>
    %c0_3 = arith.constant 0 : index
    %c0_4 = arith.constant 0 : index
    %8 = vector.load %arg2[%c0_3, %c0_4] : memref<16x32xf32, #tpu.memory_space<vmem>>, vector<16x32xf32>
    %c0_5 = arith.constant 0 : index
    %c0_6 = arith.constant 0 : index
    %9 = vector.load %arg3[%c0_5, %c0_6] : memref<32x32xf32, #tpu.memory_space<vmem>>, vector<32x32xf32>
    %c0_7 = arith.constant 0 : index
    %c0_8 = arith.constant 0 : index
    %10 = vector.load %arg4[%c0_7, %c0_8] : memref<1x32xf32, #tpu.memory_space<vmem>>, vector<1x32xf32>
    %cst_9 = arith.constant dense<0.000000e+00> : vector<16x32xf32>
    %11 = tpu.matmul %7, %8, %cst_9 {dimension_numbers = #tpu.dot_dimension_numbers<[1], [0], [0], [1], [0, 0, 1, 1], [], []>} : vector<16x16xf32>, vector<16x32xf32>, vector<16x32xf32> -> vector<16x32xf32>
    %12 = vector.broadcast %10 : vector<1x32xf32> to vector<16x32xf32>
    %13 = arith.addf %11, %12 : vector<16x32xf32>
    %cst_10 = arith.constant 0.000000e+00 : f32
    %14 = vector.broadcast %cst_10 : f32 to vector<2x32xf32>
    %15 = vector.extract_strided_slice %13 {offsets = [0, 0], sizes = [2, 32], strides = [1, 1]} : vector<16x32xf32> to vector<2x32xf32>
    %cst_11 = arith.constant dense<0.000000e+00> : vector<2x32xf32>
    %16 = tpu.matmul %14, %9, %cst_11 {dimension_numbers = #tpu.dot_dimension_numbers<[1], [0], [0], [1], [0, 0, 1, 1], [], []>} : vector<2x32xf32>, vector<32x32xf32>, vector<2x32xf32> -> vector<2x32xf32>
    %17 = arith.addf %15, %16 : vector<2x32xf32>
    %18 = math.tanh %17 : vector<2x32xf32>
    %19 = vector.extract_strided_slice %13 {offsets = [2, 0], sizes = [2, 32], strides = [1, 1]} : vector<16x32xf32> to vector<2x32xf32>
    %cst_12 = arith.constant dense<0.000000e+00> : vector<2x32xf32>
    %20 = tpu.matmul %18, %9, %cst_12 {dimension_numbers = #tpu.dot_dimension_numbers<[1], [0], [0], [1], [0, 0, 1, 1], [], []>} : vector<2x32xf32>, vector<32x32xf32>, vector<2x32xf32> -> vector<2x32xf32>
    %21 = arith.addf %19, %20 : vector<2x32xf32>
    %22 = math.tanh %21 : vector<2x32xf32>
    %23 = vector.extract_strided_slice %13 {offsets = [4, 0], sizes = [2, 32], strides = [1, 1]} : vector<16x32xf32> to vector<2x32xf32>
    %cst_13 = arith.constant dense<0.000000e+00> : vector<2x32xf32>
    %24 = tpu.matmul %22, %9, %cst_13 {dimension_numbers = #tpu.dot_dimension_numbers<[1], [0], [0], [1], [0, 0, 1, 1], [], []>} : vector<2x32xf32>, vector<32x32xf32>, vector<2x32xf32> -> vector<2x32xf32>
    %25 = arith.addf %23, %24 : vector<2x32xf32>
    %26 = math.tanh %25 : vector<2x32xf32>
    %27 = vector.extract_strided_slice %13 {offsets = [6, 0], sizes = [2, 32], strides = [1, 1]} : vector<16x32xf32> to vector<2x32xf32>
    %cst_14 = arith.constant dense<0.000000e+00> : vector<2x32xf32>
    %28 = tpu.matmul %26, %9, %cst_14 {dimension_numbers = #tpu.dot_dimension_numbers<[1], [0], [0], [1], [0, 0, 1, 1], [], []>} : vector<2x32xf32>, vector<32x32xf32>, vector<2x32xf32> -> vector<2x32xf32>
    %29 = arith.addf %27, %28 : vector<2x32xf32>
    %30 = math.tanh %29 : vector<2x32xf32>
    %31 = vector.extract_strided_slice %13 {offsets = [8, 0], sizes = [2, 32], strides = [1, 1]} : vector<16x32xf32> to vector<2x32xf32>
    %cst_15 = arith.constant dense<0.000000e+00> : vector<2x32xf32>
    %32 = tpu.matmul %30, %9, %cst_15 {dimension_numbers = #tpu.dot_dimension_numbers<[1], [0], [0], [1], [0, 0, 1, 1], [], []>} : vector<2x32xf32>, vector<32x32xf32>, vector<2x32xf32> -> vector<2x32xf32>
    %33 = arith.addf %31, %32 : vector<2x32xf32>
    %34 = math.tanh %33 : vector<2x32xf32>
    %35 = vector.extract_strided_slice %13 {offsets = [10, 0], sizes = [2, 32], strides = [1, 1]} : vector<16x32xf32> to vector<2x32xf32>
    %cst_16 = arith.constant dense<0.000000e+00> : vector<2x32xf32>
    %36 = tpu.matmul %34, %9, %cst_16 {dimension_numbers = #tpu.dot_dimension_numbers<[1], [0], [0], [1], [0, 0, 1, 1], [], []>} : vector<2x32xf32>, vector<32x32xf32>, vector<2x32xf32> -> vector<2x32xf32>
    %37 = arith.addf %35, %36 : vector<2x32xf32>
    %38 = math.tanh %37 : vector<2x32xf32>
    %39 = vector.extract_strided_slice %13 {offsets = [12, 0], sizes = [2, 32], strides = [1, 1]} : vector<16x32xf32> to vector<2x32xf32>
    %cst_17 = arith.constant dense<0.000000e+00> : vector<2x32xf32>
    %40 = tpu.matmul %38, %9, %cst_17 {dimension_numbers = #tpu.dot_dimension_numbers<[1], [0], [0], [1], [0, 0, 1, 1], [], []>} : vector<2x32xf32>, vector<32x32xf32>, vector<2x32xf32> -> vector<2x32xf32>
    %41 = arith.addf %39, %40 : vector<2x32xf32>
    %42 = math.tanh %41 : vector<2x32xf32>
    %43 = vector.extract_strided_slice %13 {offsets = [14, 0], sizes = [2, 32], strides = [1, 1]} : vector<16x32xf32> to vector<2x32xf32>
    %cst_18 = arith.constant dense<0.000000e+00> : vector<2x32xf32>
    %44 = tpu.matmul %42, %9, %cst_18 {dimension_numbers = #tpu.dot_dimension_numbers<[1], [0], [0], [1], [0, 0, 1, 1], [], []>} : vector<2x32xf32>, vector<32x32xf32>, vector<2x32xf32> -> vector<2x32xf32>
    %45 = arith.addf %43, %44 : vector<2x32xf32>
    %46 = math.tanh %45 : vector<2x32xf32>
    %47 = tpu.concatenate %18, %22, %26, %30, %34, %38, %42, %46 in 0 : vector<2x32xf32>, vector<2x32xf32>, vector<2x32xf32>, vector<2x32xf32>, vector<2x32xf32>, vector<2x32xf32>, vector<2x32xf32>, vector<2x32xf32> -> vector<16x32xf32>
    %c0_19 = arith.constant 0 : index
    %c0_20 = arith.constant 0 : index
    %48 = vector.load %arg5[%c0_19, %c0_20] : memref<32x384xf32, #tpu.memory_space<vmem>>, vector<32x384xf32>
    %cst_21 = arith.constant dense<0.000000e+00> : vector<16x384xf32>
    %49 = tpu.matmul %47, %48, %cst_21 {dimension_numbers = #tpu.dot_dimension_numbers<[1], [0], [0], [1], [0, 0, 1, 1], [], []>} : vector<16x32xf32>, vector<32x384xf32>, vector<16x384xf32> -> vector<16x384xf32>
    %c0_22 = arith.constant 0 : index
    %c0_23 = arith.constant 0 : index
    %50 = vector.load %arg6[%c0_22, %c0_23] : memref<1x384xf32, #tpu.memory_space<vmem>>, vector<1x384xf32>
    %51 = vector.broadcast %50 : vector<1x384xf32> to vector<16x384xf32>
    %52 = arith.addf %49, %51 : vector<16x384xf32>
    %c0_24 = arith.constant 0 : index
    %c0_25 = arith.constant 0 : index
    %53 = vector.load %arg7[%c0_24, %c0_25] : memref<384x2xf32, #tpu.memory_space<vmem>>, vector<384x2xf32>
    %cst_26 = arith.constant dense<0.000000e+00> : vector<16x2xf32>
    %54 = tpu.matmul %52, %53, %cst_26 {dimension_numbers = #tpu.dot_dimension_numbers<[1], [0], [0], [1], [0, 0, 1, 1], [], []>} : vector<16x384xf32>, vector<384x2xf32>, vector<16x2xf32> -> vector<16x2xf32>
    %c0_27 = arith.constant 0 : index
    %c0_28 = arith.constant 0 : index
    %55 = vector.load %arg8[%c0_27, %c0_28] : memref<1x2xf32, #tpu.memory_space<vmem>>, vector<1x2xf32>
    %56 = vector.broadcast %55 : vector<1x2xf32> to vector<16x2xf32>
    %57 = arith.addf %54, %56 : vector<16x2xf32>
    %58 = vector.extract_strided_slice %57 {offsets = [0, 0], sizes = [16, 1], strides = [1, 1]} : vector<16x2xf32> to vector<16x1xf32>
    %c0_29 = arith.constant 0 : index
    %c0_30 = arith.constant 0 : index
    %59 = vector.load %arg9[%c0_29, %c0_30] : memref<16x2xf32, #tpu.memory_space<vmem>>, vector<16x2xf32>
    %60 = vector.broadcast %58 : vector<16x1xf32> to vector<16x2xf32>
    %61 = arith.mulf %60, %59 : vector<16x2xf32>
    %62 = vector.extract_strided_slice %57 {offsets = [0, 1], sizes = [16, 1], strides = [1, 1]} : vector<16x2xf32> to vector<16x1xf32>
    %c0_31 = arith.constant 0 : index
    %c0_32 = arith.constant 0 : index
    %63 = vector.load %arg10[%c0_31, %c0_32] : memref<16x2xf32, #tpu.memory_space<vmem>>, vector<16x2xf32>
    %64 = vector.broadcast %62 : vector<16x1xf32> to vector<16x2xf32>
    %65 = arith.mulf %64, %63 : vector<16x2xf32>
    %66 = arith.addf %61, %65 : vector<16x2xf32>
    %67 = tpu.iota {dimensions = array<i32: 0>} : vector<2x16xi32>
    %68 = tpu.iota {dimensions = array<i32: 1>} : vector<2x16xi32>
    %c8_i32 = arith.constant 8 : i32
    %69 = vector.broadcast %c8_i32 : i32 to vector<2x16xi32>
    %70 = arith.muli %67, %69 : vector<2x16xi32>
    %71 = arith.cmpi sge, %68, %70 : vector<2x16xi32>
    %c8_i32_33 = arith.constant 8 : i32
    %72 = vector.broadcast %c8_i32_33 : i32 to vector<2x16xi32>
    %73 = arith.muli %67, %72 : vector<2x16xi32>
    %c8_i32_34 = arith.constant 8 : i32
    %74 = vector.broadcast %c8_i32_34 : i32 to vector<2x16xi32>
    %75 = arith.addi %73, %74 : vector<2x16xi32>
    %76 = arith.cmpi slt, %68, %75 : vector<2x16xi32>
    %77 = arith.andi %71, %76 : vector<2x16xi1>
    %78 = arith.extui %77 : vector<2x16xi1> to vector<2x16xi32>
    %79 = arith.sitofp %78 : vector<2x16xi32> to vector<2x16xf32>
    %cst_35 = arith.constant dense<0.000000e+00> : vector<2x2xf32>
    %80 = tpu.matmul %79, %66, %cst_35 {dimension_numbers = #tpu.dot_dimension_numbers<[1], [0], [0], [1], [0, 0, 1, 1], [], []>} : vector<2x16xf32>, vector<16x2xf32>, vector<2x2xf32> -> vector<2x2xf32>
    %c0_36 = arith.constant 0 : index
    %c0_37 = arith.constant 0 : index
    %81 = vector.load %arg11[%c0_36, %c0_37] : memref<1x2xf32, #tpu.memory_space<vmem>>, vector<1x2xf32>
    %82 = vector.broadcast %81 : vector<1x2xf32> to vector<2x2xf32>
    %83 = arith.addf %80, %82 : vector<2x2xf32>
    %cst_38 = arith.constant dense<0xFF800000> : vector<2xf32>
    %84 = vector.multi_reduction <maximumf>, %83, %cst_38 [1] : vector<2x2xf32> to vector<2xf32>
    %85 = vector.shape_cast %84 : vector<2xf32> to vector<2x1xf32>
    %86 = vector.broadcast %85 : vector<2x1xf32> to vector<2x2xf32>
    %87 = arith.subf %83, %86 : vector<2x2xf32>
    %88 = math.exp %87 : vector<2x2xf32>
    %cst_39 = arith.constant dense<0.000000e+00> : vector<2xf32>
    %89 = vector.multi_reduction <add>, %88, %cst_39 [1] : vector<2x2xf32> to vector<2xf32>
    %90 = vector.shape_cast %89 : vector<2xf32> to vector<2x1xf32>
    %91 = tpu.reciprocal %90 : vector<2x1xf32> -> vector<2x1xf32>
    %92 = vector.broadcast %91 : vector<2x1xf32> to vector<2x2xf32>
    %93 = arith.mulf %88, %92 : vector<2x2xf32>
    %c0_40 = arith.constant 0 : index
    %c0_41 = arith.constant 0 : index
    %94 = vector.load %arg12[%c0_40, %c0_41] : memref<2x2xf32, #tpu.memory_space<vmem>>, vector<2x2xf32>
    tpu.vector_store %arg12[%c0_40, %c0_41], %93 {strides = array<i32>} : memref<2x2xf32, #tpu.memory_space<vmem>>, vector<2x2xf32>,
    return
  }
}

</mosaic_0001>

<bundles_post_ra>
// kernel: rnn_imdb_forward.1
= control target key start
LH: loop header
LB: loop body
LE: loop exit
PB: predicated region body
PF: predicated region fallthrough
CT: control target
= control target key end

     0   :  { %v1922_v2 = vmov 0   ;;  %s2375_s0 = inlined_call_operand.vmem [shape: s32[16,1], index: 0, kind: input, shape index: {}]   ;;  %s2376_s1 = inlined_call_operand.vmem [shape: f32[51,16], index: 1, kind: input, shape index: {}]   ;;  %s2377_s2 = inlined_call_operand.vmem [shape: f32[16,32], index: 2, kind: input, shape index: {}]   ;;  %s2378_s3 = inlined_call_operand.vmem [shape: f32[32,32], index: 3, kind: input, shape index: {}]   ;;  %s2379_s4 = inlined_call_operand.vmem [shape: f32[1,32], index: 4, kind: input, shape index: {}]   ;;  %s2380_s5 = inlined_call_operand.vmem [shape: f32[32,384], index: 5, kind: input, shape index: {}]   ;;  %s2381_s6 = inlined_call_operand.vmem [shape: f32[1,384], index: 6, kind: input, shape index: {}]   ;;  %s2382_s7 = inlined_call_operand.vmem [shape: f32[384,2], index: 7, kind: input, shape index: {}]   ;;  %s2383_s8 = inlined_call_operand.vmem [shape: f32[1,2], index: 8, kind: input, shape index: {}]   ;;  %s2384_s9 = inlined_call_operand.vmem [shape: f32[16,2], index: 9, kind: input, shape index: {}]   ;;  %s2385_s10 = inlined_call_operand.vmem [shape: f32[16,2], index: 10, kind: input, shape index: {}]   ;;  %s2386_s11 = inlined_call_operand.vmem [shape: f32[1,2], index: 11, kind: input, shape index: {}]   ;;  %s2387_s12 = inlined_call_operand.hbm [shape: f32[2,2], index: 12, kind: output, shape index: {}]  }
   0x1   :  { %v42_v0 = vld [vmem:[%s2375_s0] sm:$0xff]  ;;  %1874 = vset.pattern.permute.xlu0 %v1922_v2  ;;  %v59_v3 = vld [vmem:[%s2376_s1 + $0x8] sm:$0xff]  ;;  %v60_v4 = vld [vmem:[%s2376_s1 + $0x10] sm:$0xff]  ;;  %1875 = vset.pattern.permute.xlu1 %v1922_v2 }
   0x2   :  { %v58_v1 = vld [vmem:[%s2376_s1] sm:$0xff]  ;;  %v61_v5 = vld [vmem:[%s2376_s1 + $0x18] sm:$0xff]  ;;  %47 = vperm.xlu0 %1874, %v42_v0  }
   0x3   :  { %v1721_v6 = vpack.c.bf16 %v59_v3, %v58_v1  ;;  %v1725_v7 = vpack.c.bf16 %v61_v5, %v60_v4 }
   0x4   :  { %17 = vsyncpa [#allocation3], 0  ;;  %v43_v8 = vld [vmem:[%s2375_s0 + $0x8] sm:$0xff]  ;;  %v62_v9 = vld [vmem:[%s2376_s1 + $0x20] sm:$0xff]  ;;  %vm72_vm0 = vcmask 1042432   ;;  %v44_v16 = vlaneseq  ;;  %vm65_vm1 = vcmask 416768  }
   0x5   :  { %v63_v10 = vld [vmem:[%s2376_s1 + $0x28] sm:$0xff]  ;;  %1722 = vmatprep.subr.bf16.mxu0 %v1721_v6  ;;  %v151_v12 = vld [vmem:[%s2377_s2] sm:$0xff]  ;;  %v64_v15 = vld [vmem:[%s2376_s1 + $0x30] sm:$0x7]  ;;  %v1923_v19 = vmov 0.0   ;;  %v1924_v26 = vmov 0.0|0.0  }
   0x6   :  { %1724 = vmatpush3.bf16.msra.mxu0 %v1721_v6  ;;  %50 = vperm.xlu0 %1874, %v43_v8   ;;  %v1729_v11 = vpack.c.bf16 %v63_v10, %v62_v9  ;;  %v152_v13 = vld [vmem:[%s2377_s2 + $0x8] sm:$0xff]  ;;  %v2027_v17 = vand.u32 127, %v44_v16  ;;  %v153_v23 = vld [vmem:[%s2378_s3] sm:$0xff]  ;;  %v155_v27 = vld [vmem:[%s2378_s3 + $0x10] sm:$0xff]  ;;  %vm1925_vm4 = vmmov 0   ;;  %vm164_vm5 = vcmask 130048  }
   0x7   :  { %1726 = vmatprep.subr.bf16.mxu0 %v1725_v7  ;;  %v1733_v14 = vpack.c.bf16 %v152_v13, %v151_v12  ;;  %v154_v24 = vld [vmem:[%s2378_s3 + $0x8] sm:$0xff]  ;;  %v156_v28 = vld [vmem:[%s2378_s3 + $0x18] sm:$0xff]  ;;  %v1420_v32 = vld [vmem:[%s2379_s4] ss:$0 sm:$0xff]  ;;  %vm246_vm6 = vcmask 261120   ;;  %vm870_vm7 = vcmask 1041408  }
   0x8   :  { %v2039_v25 = vpack.c.bf16 %v154_v24, %v153_v23  ;;  %v2051_v29 = vpack.c.bf16 %v156_v28, %v155_v27  ;;  %vm872_vm8 = vcmask 1043456   ;;  %vm874_vm9 = vcmask 1045504   ;;  %v880_v2 = vld [vmem:[%s2380_s5 + $0x8] sm:$0xff]  ;;  %v883_v3 = vld [vmem:[%s2380_s5 + $0x20] sm:$0xff]  ;;  %v882_v10 = vld [vmem:[%s2380_s5 + $0x18] sm:$0xff] }
   0x9   :  { %1734 = vmatprep.subr.bf16.mxu1 %v1733_v14  ;;  %v1785_v4 = vpack.c.bf16 %v883_v3, %v880_v2  ;;  %v879_v9 = vld [vmem:[%s2380_s5] sm:$0xff]  ;;  %v889_v12 = vld [vmem:[%s2380_s5 + $0x50] sm:$0xff]  ;;  %v1083_v24 = vld [vmem:[%s2382_s7 + $0x88] sm:$0xff]  ;;  %vm1388_vm13 = vcmask 9216  }
   0xa   :  { %1728 = vmatpush3.bf16.msra.mxu0 %v1725_v7  ;;  %1736 = vmatpush3.bf16.msra.mxu1 %v1733_v14  ;;  %v1787_v14 = vpack.c.bf16 %v882_v10, %v879_v9  ;;  %v1082_v23 = vld [vmem:[%s2382_s7 + $0x80] sm:$0xff]  ;;  %v1067_v28 = vld [vmem:[%s2382_s7 + $0x8] sm:$0xff]  ;;  %v1092_v3 = vld [vmem:[%s2382_s7 + $0xd0] sm:$0xff] }
   0xb   :  { %1730 = vmatprep.subr.bf16.mxu0 %v1729_v11  ;;  %1737 = vmatprep.subr.bf16.mxu1 %v1924_v26  ;;  %v1801_v27 = vpack.c.bf16 %v1083_v24, %v1082_v23  ;;  %v884_v2 = vld [vmem:[%s2380_s5 + $0x28] sm:$0xff]  ;;  %v887_v10 = vld [vmem:[%s2380_s5 + $0x40] sm:$0xff]  ;;  %v1097_v23 = vld [vmem:[%s2382_s7 + $0xf8] sm:$0xff] }
   0xe   :  { %1732 = vmatpush3.bf16.msra.mxu0 %v1729_v11  ;;  %v886_v11 = vld [vmem:[%s2380_s5 + $0x38] sm:$0xff] }
   0xf   :  { %1568 = vmatprep.subr.msk.mxu0 %vm72_vm0, %v64_v15 }
  0x12   :  { %1569 = vmatpush3.msk.msra.mxu0 %vm72_vm0, %v64_v15 }
  0x13   :  { %1749 = vmatprep.subr.bf16.mxu0 %v1924_v26 }
  0x81   :  { %v48_v18 = vpop.permute.xlu0 %47 }
  0x82   :  { %vm52_vm2 = vcmp.eq.s32.totalorder %v2027_v17, %v48_v18  ;;  %v1789_v18 = vpack.c.bf16 %v889_v12, %v886_v11  ;;  %v890_v11 = vld [vmem:[%s2380_s5 + $0x58] sm:$0xff]  ;;  %v1094_v12 = vld [vmem:[%s2382_s7 + $0xe0] sm:$0xff] }
  0x83   :  { %v1415_v20 = vsel %vm52_vm2, 1.0, %v1923_v19 }
  0x84   :  { %1570 = vmatprep.mubr.msk.f32.mxu0 %vm65_vm1, %v1415_v20  ;;  %v885_v20 = vld [vmem:[%s2380_s5 + $0x30] sm:$0xff] }
  0x85   :  { %v51_v21 = vpop.permute.xlu0 %50 }
  0x86   :  { %vm53_vm3 = vcmp.eq.s32.totalorder %v2027_v17, %v51_v21  ;;  %v888_v21 = vld [vmem:[%s2380_s5 + $0x48] sm:$0xff] }
  0x87   :  { %v1416_v22 = vsel %vm53_vm3, 1.0, %v1923_v19 }
  0x88   :  { %1571 = vmatmul.mubr.msk.f32.vlgmr.msra.gmra.mrb[0].mxu0 %vm65_vm1, %v1416_v22  ;;  %v1791_v22 = vpack.c.bf16 %v888_v21, %v885_v20 }
  0x89   :  { %1751 = vmatpush3.bf16.msra.mxu0 %v2039_v25  ;;  %1610 = vmatprep.mubr.msk.f32.mxu0 %vm1925_vm4, %v1923_v19 }
  0x8a   :  { %1752 = vmatprep.subr.bf16.mxu0 %v1924_v26 }
  0x8d   :  { %1754 = vmatpush3.bf16.msra.mxu0 %v2051_v29 }
  0x8e   :  { %1761 = vmatprep.subr.bf16.mxu0 %v1924_v26 }
 0x15b   :  { %v1572_v30 = vpop.f32.mrb[0].mxu0 }
 0x15c   :  { %v142_v31 = vpop.f32.mrb[1].mxu0 }
 0x15d   :  { %1577 = vmatprep.mubr.msk.f32.mxu1 %vm164_vm5, %v142_v31 }
 0x15e   :  { %1578 = vmatmul.mubr.msk.f32.vlgmr.msra.gmra.mrb[0].mxu1 %vm164_vm5, %v1572_v30  ;;  %v1085_v30 = vld [vmem:[%s2382_s7 + $0x98] sm:$0xff] }
 0x15f   :  { %1739 = vmatpush3.bf16.msra.mxu1 %v2039_v25  ;;  %1588 = vmatprep.mubr.msk.f32.mxu1 %vm1925_vm4, %v1923_v19 }
 0x160   :  { %1740 = vmatprep.subr.bf16.mxu1 %v1924_v26 }
 0x163   :  { %1742 = vmatpush3.bf16.msra.mxu1 %v2051_v29 }
 0x164   :  { %1743 = vmatprep.subr.bf16.mxu1 %v1924_v26 }
 0x166   :  { %1589 = vmatmul.mubr.f32.vlgmr.msra.gmra.mrb[2].mxu1 %v1923_v19 }
 0x167   :  { %1745 = vmatpush3.bf16.msra.mxu1 %v2039_v25  ;;  %1599 = vmatprep.mubr.msk.f32.mxu1 %vm1925_vm4, %v1923_v19 }
 0x168   :  { %1746 = vmatprep.subr.bf16.mxu1 %v1924_v26 }
 0x16b   :  { %1748 = vmatpush3.bf16.msra.mxu1 %v2051_v29 }
 0x16c   :  { %1755 = vmatprep.subr.bf16.mxu1 %v1924_v26 }
 0x231   :  { %v1579_v33 = vpop.f32.mrb[0].mxu1 }
 0x232   :  { %v2075_v34 = vadd.f32 %v1579_v33, %v1420_v32  ;;  %v237_v35 = vpop.f32.mrb[1].mxu1  ;;  %v1068_v33 = vld [vmem:[%s2382_s7 + $0x10] sm:$0xff] }
 0x233   :  { %v238_v36 = vadd.f32 %v1420_v32, %v237_v35  ;;  %v1069_v35 = vld [vmem:[%s2382_s7 + $0x18] sm:$0xff] }
 0x239   :  { %v316_v37 = vpop.f32.mrb[2].mxu1 }
 0x23a   :  { %v320_v38 = vadd.f32 %v316_v37, %v238_v36  ;;  %v1590_v39 = vpop.f32.mrb[3].mxu1  ;;  %v1087_v37 = vld [vmem:[%s2382_s7 + $0xa8] sm:$0xff] }
 0x23c   :  { %1878 = vtanh.f32 %v320_v38  ;;  %v1807_v38 = vpack.c.bf16 %v1069_v35, %v1068_v33 }
 0x246   :  { %v1879_v40 = vpop.eup %1878 }
 0x247   :  { %1600 = vmatmul.mubr.msk.f32.vlgmr.msra.gmra.mrb[4].mxu1 %vm246_vm6, %v1879_v40 }
 0x248   :  { %1757 = vmatpush3.bf16.msra.mxu1 %v2039_v25  ;;  %1621 = vmatprep.mubr.msk.f32.mxu1 %vm1925_vm4, %v1923_v19 }
 0x249   :  { %1758 = vmatprep.subr.bf16.mxu1 %v1924_v26 }
 0x24c   :  { %1760 = vmatpush3.bf16.msra.mxu1 %v2051_v29 }
 0x24d   :  { %1767 = vmatprep.subr.bf16.mxu1 %v1924_v26 }
 0x31a   :  { %v391_v41 = vpop.f32.mrb[4].mxu1 }
 0x31b   :  { %v396_v42 = vrot.slane %v391_v41, 6  ;;  %v1601_v43 = vpop.f32.mrb[5].mxu1  ;;  %v1071_v41 = vld [vmem:[%s2382_s7 + $0x28] sm:$0xff] }
 0x31d   :  { %v398_v44 = vadd.f32 %v396_v42, %v238_v36 }
 0x31f   :  { %1880 = vtanh.f32 %v398_v44 }
 0x329   :  { %v1881_v45 = vpop.eup %1880 }
 0x32a   :  { %v401_v46 = vrot.slane %v1881_v45, 2  ;;  %v871_v52 = vsel %vm870_vm7, %v1879_v40, %v1881_v45  ;;  %v1070_v40 = vld [vmem:[%s2382_s7 + $0x20] sm:$0xff] }
 0x32b   :  { %v1811_v42 = vpack.c.bf16 %v1071_v41, %v1070_v40  ;;  %v1100_v41 = vld [vmem:[%s2382_s7 + $0x110] sm:$0xff] }
 0x32c   :  { %1611 = vmatmul.mubr.msk.f32.vlgmr.msra.gmra.mrb[2].mxu0 %vm246_vm6, %v401_v46 }
 0x32d   :  { %1763 = vmatpush3.bf16.msra.mxu0 %v2039_v25  ;;  %1632 = vmatprep.mubr.msk.f32.mxu0 %vm1925_vm4, %v1923_v19 }
 0x32e   :  { %1764 = vmatprep.subr.bf16.mxu0 %v1924_v26 }
 0x331   :  { %1766 = vmatpush3.bf16.msra.mxu0 %v2051_v29 }
 0x332   :  { %1773 = vmatprep.subr.bf16.mxu0 %v1924_v26 }
 0x3ff   :  { %v470_v47 = vpop.f32.mrb[2].mxu0 }
 0x400   :  { %v475_v48 = vrot.slane %v470_v47, 4  ;;  %v1612_v49 = vpop.f32.mrb[3].mxu0 }
 0x402   :  { %v477_v50 = vadd.f32 %v475_v48, %v238_v36 }
 0x404   :  { %1882 = vtanh.f32 %v477_v50 }
 0x40e   :  { %v1883_v51 = vpop.eup %1882 }
 0x40f   :  { %v480_v53 = vrot.slane %v1883_v51, 4  ;;  %v873_v54 = vsel %vm872_vm8, %v871_v52, %v1883_v51 }
 0x411   :  { %1622 = vmatmul.mubr.msk.f32.vlgmr.msra.gmra.mrb[6].mxu1 %vm246_vm6, %v480_v53  ;;  %v1088_v53 = vld [vmem:[%s2382_s7 + $0xb0] sm:$0xff] }
 0x412   :  { %1769 = vmatpush3.bf16.msra.mxu1 %v2039_v25  ;;  %1643 = vmatprep.mubr.msk.f32.mxu1 %vm1925_vm4, %v1923_v19 }
 0x413   :  { %1770 = vmatprep.subr.bf16.mxu1 %v1924_v26 }
 0x416   :  { %1772 = vmatpush3.bf16.msra.mxu1 %v2051_v29 }
 0x417   :  { %1779 = vmatprep.subr.bf16.mxu1 %v1924_v26 }
 0x4e4   :  { %v549_v55 = vpop.f32.mrb[6].mxu1 }
 0x4e5   :  { %v554_v56 = vrot.slane %v549_v55, 2  ;;  %v1623_v57 = vpop.f32.mrb[7].mxu1 }
 0x4e6   :  { %v1073_v57 = vld [vmem:[%s2382_s7 + $0x38] sm:$0xff] }
 0x4e7   :  { %v556_v58 = vadd.f32 %v554_v56, %v238_v36  ;;  %v1086_v36 = vld [vmem:[%s2382_s7 + $0xa0] sm:$0xff]  ;;  %v1072_v56 = vld [vmem:[%s2382_s7 + $0x30] sm:$0xff] }
 0x4e8   :  { %v1809_v39 = vpack.c.bf16 %v1087_v37, %v1086_v36  ;;  %v2279_v37 = vshrl.u32 %v44_v16, 7 }
 0x4e9   :  { %1884 = vtanh.f32 %v556_v58  ;;  %v1815_v58 = vpack.c.bf16 %v1073_v57, %v1072_v56  ;;  %v1108_v56 = vld [vmem:[%s2382_s7 + $0x150] sm:$0xff]  ;;  %v1109_v57 = vld [vmem:[%s2382_s7 + $0x158] sm:$0xff] }
 0x4f3   :  { %v1885_v59 = vpop.eup %1884 }
 0x4f4   :  { %v559_v60 = vrot.slane %v1885_v59, 6  ;;  %v2101_v61 = vsel %vm874_vm9, %v873_v54, %v1885_v59  ;;  %v1089_v54 = vld [vmem:[%s2382_s7 + $0xb8] sm:$0xff]  ;;  %v1090_v59 = vld [vmem:[%s2382_s7 + $0xc0] sm:$0xff] }
 0x4f5   :  { %v1813_v55 = vpack.c.bf16 %v1089_v54, %v1088_v53  ;;  %v1106_v54 = vld [vmem:[%s2382_s7 + $0x140] sm:$0xff] }
 0x4f6   :  { %1633 = vmatmul.mubr.msk.f32.vlgmr.msra.gmra.mrb[4].mxu0 %vm246_vm6, %v559_v60  ;;  %v1091_v60 = vld [vmem:[%s2382_s7 + $0xc8] sm:$0xff] }
 0x4f7   :  { %1775 = vmatpush3.bf16.msra.mxu0 %v2039_v25  ;;  %1654 = vmatprep.mubr.msk.f32.mxu0 %vm1925_vm4, %v1923_v19 }
 0x4f8   :  { %1776 = vmatprep.subr.bf16.mxu0 %v1924_v26 }
 0x4fb   :  { %1778 = vmatpush3.bf16.msra.mxu0 %v2051_v29 }
 0x4fc   :  { %1786 = vmatprep.subr.bf16.mxu0 %v1785_v4 }
 0x5c9   :  { %v628_v62 = vpop.f32.mrb[4].mxu0 }
 0x5ca   :  { %v632_v63 = vadd.f32 %v628_v62, %v2075_v34  ;;  %v1634_v0 = vpop.f32.mrb[5].mxu0  ;;  %v1074_v62 = vld [vmem:[%s2382_s7 + $0x40] sm:$0xff] }
 0x5cc   :  { %1886 = vtanh.f32 %v632_v63  ;;  %v1075_v63 = vld [vmem:[%s2382_s7 + $0x48] sm:$0xff] }
 0x5cd   :  { %v1819_v0 = vpack.c.bf16 %v1075_v63, %v1074_v62  ;;  %v1112_v62 = vld [vmem:[%s2382_s7 + $0x170] sm:$0xff]  ;;  %v1113_v63 = vld [vmem:[%s2382_s7 + $0x178] sm:$0xff] }
 0x5d6   :  { %v2110_v1 = vpop.eup %1886 }
 0x5d7   :  { %1644 = vmatmul.mubr.msk.f32.vlgmr.msra.gmra.mrb[8].mxu1 %vm246_vm6, %v2110_v1 }
 0x5d8   :  { %1781 = vmatpush3.bf16.msra.mxu1 %v2039_v25  ;;  %1665 = vmatprep.mubr.msk.f32.mxu1 %vm1925_vm4, %v1923_v19  ;;  %v1066_v25 = vld [vmem:[%s2382_s7] sm:$0xff] }
 0x5d9   :  { %1782 = vmatprep.subr.bf16.mxu1 %v1924_v26  ;;  %v1803_v31 = vpack.c.bf16 %v1067_v28, %v1066_v25  ;;  %v1080_v25 = vld [vmem:[%s2382_s7 + $0x70] sm:$0xff] }
 0x5dc   :  { %1784 = vmatpush3.bf16.msra.mxu1 %v2051_v29  ;;  %v1084_v29 = vld [vmem:[%s2382_s7 + $0x90] sm:$0xff] }
 0x5dd   :  { %v1805_v32 = vpack.c.bf16 %v1085_v30, %v1084_v29  ;;  %v1098_v29 = vld [vmem:[%s2382_s7 + $0x100] sm:$0xff]  ;;  %v1099_v30 = vld [vmem:[%s2382_s7 + $0x108] sm:$0xff] }
 0x6aa   :  { %v703_v5 = vpop.f32.mrb[8].mxu1 }
 0x6ab   :  { %v708_v6 = vrot.slane %v703_v5, 6  ;;  %v1645_v7 = vpop.f32.mrb[9].mxu1  ;;  %v1093_v5 = vld [vmem:[%s2382_s7 + $0xd8] sm:$0xff] }
 0x6ac   :  { %v1077_v7 = vld [vmem:[%s2382_s7 + $0x58] sm:$0xff] }
 0x6ad   :  { %v710_v8 = vadd.f32 %v708_v6, %v2075_v34  ;;  %v1076_v6 = vld [vmem:[%s2382_s7 + $0x50] sm:$0xff] }
 0x6ae   :  { %v1823_v9 = vpack.c.bf16 %v1077_v7, %v1076_v6 }
 0x6af   :  { %1888 = vtanh.f32 %v710_v8  ;;  %v1821_v8 = vpack.c.bf16 %v1093_v5, %v1092_v3 }
 0x6b9   :  { %v1889_v13 = vpop.eup %1888 }
 0x6ba   :  { %v713_v15 = vrot.slane %v1889_v13, 2  ;;  %v876_v50 = vsel %vm870_vm7, %v2110_v1, %v1889_v13  ;;  %v881_v1 = vld [vmem:[%s2380_s5 + $0x10] sm:$0xff]  ;;  %v1797_v13 = vpack.c.bf16 %v890_v11, %v887_v10  ;;  %s1927_s5 = smov [#allocation2]  }
 0x6bb   :  { %v1793_v4 = vpack.c.bf16 %v884_v2, %v881_v1  ;;  %v903_v1 = vsub.s32 2, %v2279_v37  ;;  %s1407_s0 = sshll.u32 %s1927_s5, 4  ;;  %s1408_s0 = int_to_ptr.vmem [resolvable:$true] %s1407_s0 }
 0x6bc   :  { %1655 = vmatmul.mubr.msk.f32.vlgmr.msra.gmra.mrb[6].mxu0 %vm246_vm6, %v713_v15  ;;  %v1078_v15 = vld [vmem:[%s2382_s7 + $0x60] sm:$0xff]  ;;  %p1903_p1 = scmp.lt.s32.totalorder %s1408_s0, %s1408_s0 }
 0x6bd   :  { %1788 = vmatpush1.bf16.msra.mxu0 %v1787_v14  ;;  %978 = vmatprep.mubr.f32.mxu0 %v1923_v19  ;;  %v1095_v14 = vld [vmem:[%s2382_s7 + $0xe8] sm:$0xff] }
 0x6be   :  { %1790 = vmatprep.subr.bf16.mxu0 %v1789_v18  ;;  %1794 = vmatprep.subr.bf16.mxu1 %v1793_v4  ;;  %v1079_v18 = vld [vmem:[%s2382_s7 + $0x68] sm:$0xff]  ;;  %v1825_v20 = vpack.c.bf16 %v1095_v14, %v1094_v12  ;;  %v1926_v14 = vmov 1  }
 0x6bf   :  { %v1827_v21 = vpack.c.bf16 %v1079_v18, %v1078_v15  ;;  %1876 = vset.pattern.permute.xlu0 %v1926_v14  ;;  %v1434_v15 = vld [vmem:[%s2383_s8] ss:$0 sm:$0xff] }
 0x6c1   :  { %1792 = vmatpush1.bf16.msra.mxu0 %v1791_v22  ;;  %v1096_v22 = vld [vmem:[%s2382_s7 + $0xf0] sm:$0xff] }
 0x6c2   :  { %1802 = vmatprep.subr.bf16.mxu0 %v1801_v27  ;;  %v1829_v24 = vpack.c.bf16 %v1097_v23, %v1096_v22  ;;  %v1081_v27 = vld [vmem:[%s2382_s7 + $0x78] sm:$0xff] }
 0x6c3   :  { %v1831_v28 = vpack.c.bf16 %v1081_v27, %v1080_v25 }
 0x6c4   :  { %1430 = vmatmul.mubr.msk.f32.vlgmr.msra.gmra.mrb[8].mxu0 %vm246_vm6, %v2101_v61 }
 0x6c5   :  { %984 = vmatprep.mubr.f32.mxu0 %v1923_v19  ;;  %1804 = vmatpush3.bf16.msra.mxu0 %v1803_v31  ;;  %v1833_v31 = vpack.c.bf16 %v1099_v30, %v1098_v29  ;;  %v1301_v30 = vmul.u32 8, %v2279_v37 }
 0x6c6   :  { %1806 = vmatprep.subr.bf16.mxu0 %v1805_v32 }
 0x6c7   :  { %vm1302_vm10 = vcmp.ge.s32.totalorder %v2027_v17, %v1301_v30 }
 0x6c9   :  { %1808 = vmatpush3.bf16.msra.mxu0 %v1807_v38  ;;  %v891_v38 = vld [vmem:[%s2381_s6] sm:$0x7] }
 0x6ca   :  { %1810 = vmatprep.subr.bf16.mxu0 %v1809_v39  ;;  %v895_v39 = vsub.s32 0, %v2279_v37  ;;  %v904_v2 = vrot.slane %v891_v38, %v903_v1 }
 0x6cd   :  { %1812 = vmatpush3.bf16.msra.mxu0 %v1811_v42  ;;  %v896_v42 = vrot.slane %v891_v38, %v895_v39 }
 0x6ce   :  { %1814 = vmatprep.subr.bf16.mxu0 %v1813_v55 }
 0x6d1   :  { %1816 = vmatpush3.bf16.msra.mxu0 %v1815_v58  ;;  %v1853_v58 = vpack.c.bf16 %v1109_v57, %v1108_v56 }
 0x78f   :  { %v782_v43 = vpop.f32.mrb[6].mxu0 }
 0x790   :  { %v787_v44 = vrot.slane %v782_v43, 4  ;;  %v1656_v45 = vpop.f32.mrb[7].mxu0 }
 0x792   :  { %v789_v46 = vadd.f32 %v787_v44, %v2075_v34 }
 0x794   :  { %1890 = vtanh.f32 %v789_v46  ;;  %v1102_v46 = vld [vmem:[%s2382_s7 + $0x120] sm:$0xff] }
 0x797   :  { %v2186_v47 = vpop.f32.mrb[8].mxu0 }
 0x798   :  { %v2188_v48 = vpop.f32.mrb[9].mxu0 }
 0x79e   :  { %v1891_v49 = vpop.eup %1890 }
 0x79f   :  { %v792_v51 = vrot.slane %v1891_v49, 4  ;;  %v2193_v52 = vsel %vm872_vm8, %v876_v50, %v1891_v49  ;;  %v1103_v49 = vld [vmem:[%s2382_s7 + $0x128] sm:$0xff]  ;;  %v981_v50 = vadd.f32 %v2186_v47, %v896_v42 }
 0x7a0   :  { %v1107_v47 = vld [vmem:[%s2382_s7 + $0x148] sm:$0xff] }
 0x7a1   :  { %1666 = vmatmul.mubr.msk.f32.vlgmr.msra.gmra.mrb[10].mxu1 %vm246_vm6, %v792_v51  ;;  %v1104_v51 = vld [vmem:[%s2382_s7 + $0x130] sm:$0xff]  ;;  %v1849_v55 = vpack.c.bf16 %v1107_v47, %v1106_v54 }
 0x7a2   :  { %1676 = vmatprep.mubr.msk.f32.mxu1 %vm246_vm6, %v2101_v61  ;;  %v1817_v61 = vpack.c.bf16 %v1091_v60, %v1090_v59  ;;  %1796 = vmatpush3.bf16.msra.mxu1 %v1793_v4  ;;  %v1110_v59 = vld [vmem:[%s2382_s7 + $0x160] sm:$0xff]  ;;  %v1111_v60 = vld [vmem:[%s2382_s7 + $0x168] sm:$0xff] }
 0x7a3   :  { %1798 = vmatprep.subr.bf16.mxu1 %v1797_v13 }
 0x7a4   :  { %1818 = vmatprep.subr.bf16.mxu0 %v1817_v61  ;;  %v1857_v61 = vpack.c.bf16 %v1111_v60, %v1110_v59 }
 0x7a5   :  { %1820 = vmatpush3.bf16.msra.mxu0 %v1819_v0  ;;  %v1861_v0 = vpack.c.bf16 %v1113_v63, %v1112_v62 }
 0x7a6   :  { %1822 = vmatprep.subr.bf16.mxu0 %v1821_v8  ;;  %1800 = vmatpush3.bf16.msra.mxu1 %v1797_v13 }
 0x7a7   :  { %1834 = vmatprep.subr.bf16.mxu1 %v1833_v31 }
 0x7a9   :  { %1824 = vmatpush3.bf16.msra.mxu0 %v1823_v9 }
 0x7aa   :  { %1826 = vmatprep.subr.bf16.mxu0 %v1825_v20 }
 0x7ad   :  { %1828 = vmatpush3.bf16.msra.mxu0 %v1827_v21 }
 0x7ae   :  { %1830 = vmatprep.subr.bf16.mxu0 %v1829_v24 }
 0x7b1   :  { %1832 = vmatpush3.bf16.msra.mxu0 %v1831_v28 }
 0x7b2   :  { %1865 = vmatprep.subr.bf16.mxu0 %v1924_v26  ;;  %v899_v26 = vsub.s32 1, %v2279_v37 }
 0x7b4   :  { %v900_v40 = vrot.slane %v891_v38, %v899_v26  ;;  %v1272_v26 = vld [vmem:[%s2384_s9 + $0x8] sm:$0xff] }
 0x7b5   :  { %v1286_v38 = vld [vmem:[%s2385_s10 + $0x8] sm:$0xff] }
 0x7b6   :  { %v983_v44 = vadd.f32 %v2188_v48, %v900_v40  ;;  %v1841_v48 = vpack.c.bf16 %v1103_v49, %v1102_v46 }
 0x874   :  { %v861_v32 = vpop.f32.mrb[10].mxu1 }
 0x875   :  { %v866_v33 = vrot.slane %v861_v32, 2  ;;  %v1667_v35 = vpop.f32.mrb[11].mxu1  ;;  %v1285_v32 = vld [vmem:[%s2385_s10] sm:$0xff] }
 0x876   :  { %v1271_v35 = vld [vmem:[%s2384_s9] sm:$0xff] }
 0x877   :  { %v868_v36 = vadd.f32 %v866_v33, %v2075_v34  ;;  %v1101_v34 = vld [vmem:[%s2382_s7 + $0x118] sm:$0xff] }
 0x878   :  { %v1837_v43 = vpack.c.bf16 %v1101_v34, %v1100_v41 }
 0x879   :  { %1892 = vtanh.f32 %v868_v36  ;;  %v1303_v36 = vadd.s32 8, %v1301_v30 }
 0x87b   :  { %vm1304_vm11 = vcmp.lt.s32.totalorder %v2027_v17, %v1303_v36 }
 0x87c   :  { %vm1305_vm12 = vmand %vm1302_vm10, %vm1304_vm11 }
 0x883   :  { %v1893_v16 = vpop.eup %1892 }
 0x884   :  { %v878_v45 = vsel %vm874_vm9, %v2193_v52, %v1893_v16  ;;  %v1105_v52 = vld [vmem:[%s2382_s7 + $0x138] sm:$0xff] }
 0x885   :  { %1431 = vmatmul.mubr.msk.f32.gmra.mrb[10].mxu0 %vm246_vm6, %v878_v45  ;;  %1677 = vmatmul.mubr.msk.f32.vlgmr.msra.gmra.mrb[12].mxu1 %vm246_vm6, %v878_v45  ;;  %v1845_v53 = vpack.c.bf16 %v1105_v52, %v1104_v51  ;;  %v1436_v45 = vld [vmem:[%s2386_s11] ss:$0 sm:$0xff]  ;;  %s1898_s11 = scalar_lea.vmem %s1408_s0, 32 }
 0x886   :  { %1185 = vmatprep.mubr.f32.mxu0 %v983_v44  ;;  %1836 = vmatpush3.bf16.msra.mxu1 %v1833_v31  ;;  %v1435_v44 = vsel %vm1305_vm12, 1.0, %v1923_v19  ;;  %p1899_p0 = scmp.ne.s32.totalorder %s1408_s0, %s1898_s11  ;;  %p1904_p2 = scmp.lt.s32.totalorder %s1898_s11, %s1898_s11 }
 0x887   :  { %1838 = vmatprep.subr.bf16.mxu1 %v1837_v43 }
 0x888   :  { %p1905_p3 = por %p1904_p2, %p1903_p1 }
 0x889   :  { %1186 = vmatmul.mubr.f32.vlgmr.msra.gmra.mrb[12].mxu0 %v981_v50 }
 0x88a   :  { %1840 = vmatpush3.bf16.msra.mxu1 %v1837_v43  ;;  %p1906_p4 = pnand %p1905_p3, %p1899_p0 }
 0x88b   :  { %1842 = vmatprep.subr.bf16.mxu1 %v1841_v48 }
 0x88e   :  { %1844 = vmatpush3.bf16.msra.mxu1 %v1841_v48 }
 0x88f   :  { %1846 = vmatprep.subr.bf16.mxu1 %v1845_v53 }
 0x892   :  { %1848 = vmatpush3.bf16.msra.mxu1 %v1845_v53 }
 0x893   :  { %1850 = vmatprep.subr.bf16.mxu1 %v1849_v55 }
 0x896   :  { %1852 = vmatpush3.bf16.msra.mxu1 %v1849_v55 }
 0x897   :  { %1854 = vmatprep.subr.bf16.mxu1 %v1853_v58 }
 0x89a   :  { %1856 = vmatpush3.bf16.msra.mxu1 %v1853_v58 }
 0x89b   :  { %1858 = vmatprep.subr.bf16.mxu1 %v1857_v61 }
 0x89e   :  { %1860 = vmatpush3.bf16.msra.mxu1 %v1857_v61 }
 0x89f   :  { %1862 = vmatprep.subr.bf16.mxu1 %v1861_v0 }
 0x8a2   :  { %1864 = vmatpush3.bf16.msra.mxu1 %v1861_v0 }
 0x958   :  { %v986_v3 = vpop.f32.mrb[10].mxu0  ;;  %v1678_v4 = vpop.f32.mrb[12].mxu1 }
 0x959   :  { %v988_v5 = vpop.f32.mrb[11].mxu0  ;;  %v1057_v6 = vpop.f32.mrb[13].mxu1  ;;  %v987_v9 = vadd.f32 %v986_v3, %v896_v42  ;;  %v1063_v10 = vadd.f32 %v1678_v4, %v904_v2 }
 0x95a   :  { %v989_v7 = vadd.f32 %v988_v5, %v900_v40  ;;  %v1058_v8 = vadd.f32 %v1057_v6, %v904_v2 }
 0x95c   :  { %v1529_v11 = vpop.f32.mrb[12].mxu0  ;;  %1190 = vmatprep.mubr.f32.mxu0 %v989_v7  ;;  %1711 = vmatprep.mubr.f32.mxu1 %v1058_v8 }
 0x95d   :  { %v1530_v12 = vpop.f32.mrb[13].mxu0  ;;  %1191 = vmatmul.mubr.f32.gmra.mrb[14].mxu0 %v987_v9  ;;  %1712 = vmatmul.mubr.f32.vlgmr.msra.gmra.mrb[14].mxu1 %v1063_v10 }
 0x95e   :  { %v1531_v13 = vadd.f32 %v1530_v12, %v1529_v11  ;;  %1718 = vmatprep.mubr.msk.f32.mxu0 %vm1925_vm4, %v1923_v19 }
 0x960   :  { %v1188_v21 = vadd.f32 %v1531_v13, %v1434_v15 }
 0xa30   :  { %v1532_v18 = vpop.f32.mrb[14].mxu0  ;;  %v1713_v20 = vpop.f32.mrb[14].mxu1 }
 0xa31   :  { %v1533_v22 = vpop.f32.mrb[15].mxu0  ;;  %v1262_v23 = vpop.f32.mrb[15].mxu1 }
 0xa32   :  { %v1534_v24 = vadd.f32 %v1533_v22, %v1532_v18  ;;  %v1263_v25 = vadd.f32 %v1262_v23, %v1188_v21 }
 0xa34   :  { %v1193_v27 = vadd.f32 %v1534_v24, %v1434_v15  ;;  %1288 = vperm.xlu0 %1876, %v1263_v25   ;;  %1275 = vperm.xlu1 %1875, %v1263_v25  }
 0xa36   :  { %v1268_v28 = vadd.f32 %v1713_v20, %v1193_v27 }
 0xa38   :  { %1280 = vperm.xlu1 %1875, %v1268_v28  }
 0xa3c   :  { %1877 = vset.pattern.permute.xlu1 %v1926_v14 }
 0xa3d   :  { %1292 = vperm.xlu1 %1877, %v1268_v28  }
 0xab3   :  { %v1276_v29 = vpop.permute.xlu1 %1275  ;;  %v1289_v33 = vpop.permute.xlu0 %1288 }
 0xab4   :  { %v1295_v37 = vmul.f32 %v1289_v33, %v1285_v32  ;;  %v1283_v39 = vmul.f32 %v1276_v29, %v1271_v35 }
 0xab6   :  { %v1297_v16 = vadd.f32 %v1295_v37, %v1283_v39 }
 0xab7   :  { %v1281_v31 = vpop.permute.xlu1 %1280 }
 0xab8   :  { %v1284_v41 = vmul.f32 %v1281_v31, %v1272_v26 }
 0xabc   :  { %v1293_v40 = vpop.permute.xlu1 %1292 }
 0xabd   :  { %v1296_v34 = vmul.f32 %v1293_v40, %v1286_v38 }
 0xabf   :  { %v1298_v42 = vadd.f32 %v1296_v34, %v1284_v41 }
 0xac1   :  { %v1866_v43 = vpack.c.bf16 %v1298_v42, %v1297_v16 }
 0xac3   :  { %1867 = vmatpush3.bf16.msra.mxu0 %v1866_v43 }
 0xac6   :  { %1719 = vmatmul.mubr.msk.f32.vlgmr.msra.gmra.mrb[16].mxu0 %vm164_vm5, %v1435_v44 }
 0xb99   :  { %v1384_v46 = vpop.f32.mrb[16].mxu0 }
 0xb9a   :  { %v1385_v49 = vadd.f32 %v1436_v45, %v1384_v46  ;;  %v1720_v50 = vpop.f32.mrb[17].mxu0 }
 0xb9c   :  { %v1389_v48 = vsel %vm1388_vm13, %v1385_v49, -inf }
 0xb9d   :  { %1390 = vmax.xlane.f32.xlu1 %v1389_v48 }
 0xc2a   :  { %v1391_v17 = vpop.xlane.xlu1 %1390 }
 0xc2b   :  { %v1392_v51 = vsub.f32 %v1385_v49, %v1391_v17 }
 0xc2d   :  { %v1393_v52 = vmul.f32 1.442695, %v1392_v51 }
 0xc2f   :  { %1894 = vpow2.f32 %v1393_v52 }
 0xc39   :  { %v1895_v53 = vpop.eup %1894 }
 0xc3a   :  { %v1395_v19 = vsel %vm1388_vm13, %v1895_v53, 0.0 }
 0xc3b   :  { %1396 = vadd.xlane.f32.xlu0 %v1395_v19 }
 0xcc8   :  { %v1397_v54 = vpop.xlane.xlu0 %1396 }
 0xcc9   :  { %1896 = vrcp.f32 %v1397_v54 }
 0xcd3   :  { %v1897_v47 = vpop.eup %1896 }
 0xcd4   :  { %v1399_v55 = vmul.f32 %v1897_v47, %v1895_v53 }
 0xcd6   :  { %1400 = vst.msk [vmem:[#allocation2] sm:$0x3] %vm1388_vm13, %v1399_v55 }
 0xcd7   :  { %1909 = shalt.err (!%p1906_p4)
}
 0xcd8   :  { %s1910_s2 = scalar_lea.hbm %s2387_s12, 32 }
 0xcd9   :  { %p1911_p5 = scmp.ne.s32.totalorder %s2387_s12, %s1910_s2  ;;  %p1914_p6 = scmp.lt.u32.totalorder %s1910_s2, %s2387_s12 }
 0xcdb   :  { %p1916_p7 = pnand %p1914_p6, %p1911_p5 }
 0xcdd   :  { %1919 = shalt.err (!%p1916_p7)
}
 0xcde   :  { %1410 = dma.vmem_to_hbm [thread:$0]  %s1408_s0, 32, %s2387_s12, [#allocation3]  }
 0xcdf   :  { %1920 = dma.done.wait [#allocation3], 32  }
 0xce0   :  { %1921 = vsyncadd [#allocation3], 4294967264 }
 0xce1   :  { %1414 = vsyncpa [#allocation3], 1 }

</bundles_post_ra>
